<compile_context>
chip_gen: v7x
topology: tpu7x:2x2x1
jax: 0.10.0
libtpu: 0.0.40
codegen_flags: <defaults>
</compile_context>

<pallas_src>
import jax
import jax.numpy as jnp
from jax.experimental import pallas as pl
from jax.experimental.pallas import tpu as pltpu


def attention_kernel(data_ref, key_ref, w_ref, b_ref, out_ref):
    # data_ref: (TB, H)   key_ref: (TB, S, H)   w_ref: (2, H)   b_ref: (1,) in SMEM
    data = data_ref[...].astype(jnp.float32)          # (TB, H)
    key_f = key_ref[...].astype(jnp.float32)          # (TB, S, H), f32 math
    w = w_ref[...].astype(jnp.float32)                # (2, H)
    wd = w[0, :]                                      # (H,)  data-half of Linear(2H->1)
    wk = w[1, :]                                      # (H,)  key-half
    bias = b_ref[0]                                   # scalar from SMEM

    # Linear(2H -> 1): [data ; key] @ W^T + b == data@wd + key@wk + b
    # Both contractions are trivially small -> VPU multiply + XLU lane reduce;
    # keeps the MXU/extended slot free (kernel is HBM-bandwidth bound anyway).
    d_score = jnp.sum(data * wd[None, :], axis=-1, keepdims=True)          # (TB, 1)
    k_score = jnp.sum(key_f * wk[None, None, :], axis=-1)                  # (TB, S)
    scores = jnp.tanh(k_score + d_score + bias)                            # (TB, S)

    # Softmax over the sequence axis (torch dim=1). Exact division for parity
    # with the PyTorch module (divide cost is invisible at the HBM roofline).
    m = jnp.max(scores, axis=1, keepdims=True)
    e = jnp.exp(scores - m)
    denom = jnp.sum(e, axis=1, keepdims=True)
    attn = e / denom                                                        # (TB, S)

    # Weighted pooling over S: VPU multiply + sublane (second-minor) reduce,
    # f32 accumulation; the broadcast temp lives in vregs, not HBM.
    pooled = jnp.sum(attn[:, :, None] * key_f, axis=1)                      # (TB, H)
    out_ref[...] = pooled.astype(out_ref.dtype)


def _vmem_plan():
    """Generation-aware (scoped-VMEM limit, per-buffer key-tile budget) in bytes."""
    try:
        info = pltpu.get_tpu_info()
        phys = int(getattr(info, "vmem_capacity_bytes", 64 << 20))
    except Exception:
        phys = 64 << 20                    # assume the smallest (v7x per-TC)
    if phys <= (64 << 20):                 # v7x: 64 MiB physical
        return 32 << 20, 6 << 20
    return 64 << 20, 12 << 20              # v5e / v6e: 128 MiB physical


def attention_forward(data, key, weight, bias, *, stream_dtype=None, key_buffers=2):
    """data: (B, H), key: (B, S, H), weight: (1, 2H) [torch Linear layout], bias: (1,).

    stream_dtype: optionally cast the streamed data/key to e.g. jnp.bfloat16 to
    halve HBM traffic (math stays f32 in-kernel). key_buffers=3 enables triple
    buffering of the key stream if profiling shows exposed DMA.
    """
    B, H = data.shape
    _, S, _ = key.shape
    assert key.shape == (B, S, H) and weight.shape == (1, 2 * H) and bias.shape == (1,)

    out_dtype = data.dtype
    if stream_dtype is not None:
        # Halves bytes moved for the dominant key stream (in a real pipeline the
        # producer would already emit bf16; here the cast is a one-off XLA copy).
        data = data.astype(stream_dtype)
        key = key.astype(stream_dtype)

    # Glue: split the Linear weight into data-half (row 0) / key-half (row 1)
    # as a single (2, H) array -> one small weight DMA. Bias scalar -> SMEM.
    w2 = weight.reshape(2, H).astype(jnp.float32)
    bias_s = bias.reshape(1).astype(jnp.float32)

    vmem_limit, buf_budget = _vmem_plan()

    key_isz = jnp.dtype(key.dtype).itemsize
    dat_isz = jnp.dtype(data.dtype).itemsize
    out_isz = jnp.dtype(out_dtype).itemsize
    bytes_per_row = S * H * key_isz

    # Batch tile: biggest that keeps one key tile within the per-buffer budget...
    tb = min(B, max(1, buf_budget // max(int(bytes_per_row), 1)))
    # ...but capped so the grid has >= 4 steps when B allows (both v7x TCs get
    # work, key DMA stays hidden; tiles this size already sit at the roofline).
    if B >= 4:
        tb = min(tb, max(1, B // 4))
    # Keep partial blocks sublane-aligned when possible; only ever round DOWN so
    # the double-buffered footprint can never exceed the budget.
    if tb < B and tb >= 8:
        tb = (tb // 8) * 8

    def _tile_bytes(t):
        per_step = t * S * H * key_isz + t * H * dat_isz + t * H * out_isz
        return 2 * per_step + 2 * H * 4      # double-buffered tiles + weight

    while tb > 1 and _tile_bytes(tb) > vmem_limit:
        tb = max(1, tb // 2)

    grid = (pl.cdiv(B, tb),)

    key_spec_kwargs = {}
    if key_buffers != 2:
        key_spec_kwargs["pipeline_mode"] = pl.Buffered(key_buffers)

    # TODO(synk): for production shapes, fold heads/problems so H is a multiple
    # of 128 (lane-dense key tiles and unmasked output stores); at toy H=32 the
    # blocks simply span the full H dim.
    return pl.pallas_call(
        attention_kernel,
        out_shape=jax.ShapeDtypeStruct((B, H), out_dtype),
        grid=grid,
        in_specs=[
            pl.BlockSpec((tb, H), lambda i: (i, 0)),
            pl.BlockSpec((tb, S, H), lambda i: (i, 0, 0), **key_spec_kwargs),
            pl.BlockSpec((2, H), lambda i: (0, 0)),
            pl.BlockSpec(memory_space=pltpu.MemorySpace.SMEM),   # bias scalar
        ],
        out_specs=pl.BlockSpec((tb, H), lambda i: (i, 0)),
        compiler_params=pltpu.CompilerParams(
            dimension_semantics=("parallel",),    # shards grid across v7x's 2 TCs
            vmem_limit_bytes=vmem_limit,
        ),
    )(data, key, w2, bias_s)


def attention_reference(data, key, weight, bias):
    """Pure-JAX reference mirroring the PyTorch module exactly."""
    B, S, H = key.shape
    data_ = jnp.broadcast_to(data[:, None, :], (B, S, H))
    attn_in = jnp.concatenate([data_, key], axis=2)                 # (B, S, 2H)
    logits = attn_in @ weight.T + bias                              # (B, S, 1)
    scores = jnp.tanh(logits)
    attn = jax.nn.softmax(scores, axis=1)                           # (B, S, 1)
    return jnp.sum(attn * key, axis=1).reshape(-1, H)               # (B, H)


if __name__ == "__main__":
    B, S, H = 2, 8, 32

    root = jax.random.PRNGKey(0)
    k_data, k_key, k_w, k_b = jax.random.split(root, 4)

    data = jax.random.normal(k_data, (B, H), dtype=jnp.float32)
    key = jax.random.normal(k_key, (B, S, H), dtype=jnp.float32)

    # Deterministic init matching nn.Linear(2H, 1): U(-1/sqrt(2H), 1/sqrt(2H))
    bound = float(1.0 / (2.0 * H) ** 0.5)
    weight = jax.random.uniform(k_w, (1, 2 * H), minval=-bound, maxval=bound,
                                dtype=jnp.float32)
    bias = jax.random.uniform(k_b, (1,), minval=-bound, maxval=bound,
                              dtype=jnp.float32)

    ref = attention_reference(data, key, weight, bias)

    # f32 path: exact parity with the PyTorch module.
    out = attention_forward(data, key, weight, bias)
    jax.block_until_ready(out)
    assert out.shape == (B, H)
    assert jnp.allclose(out, ref, atol=1e-4, rtol=1e-4), "f32 mismatch vs reference"

    # bf16-streaming path: halves HBM traffic on the key stream; math stays f32.
    out_bf16 = attention_forward(data, key, weight, bias, stream_dtype=jnp.bfloat16)
    jax.block_until_ready(out_bf16)
    assert jnp.allclose(out_bf16, ref, atol=5e-2, rtol=5e-2), "bf16 mismatch vs reference"

    print("KERNEL_OK")
</pallas_src>

<mosaic_0001>
module attributes {stable_mosaic.version = 11 : i64} {
  func.func @attention_kernel(%arg0: i32, %arg1: memref<2x32xf32, #tpu.memory_space<vmem>>, %arg2: memref<2x8x32xf32, #tpu.memory_space<vmem>>, %arg3: memref<2x32xf32, #tpu.memory_space<vmem>>, %arg4: memref<1xf32, #tpu.memory_space<smem>>, %arg5: memref<2x32xf32, #tpu.memory_space<vmem>>) attributes {dimension_semantics = [#tpu.dimension_semantics<parallel>], iteration_bounds = array<i64: 1>, scalar_prefetch = 0 : i64, scratch_operands = 0 : i64, tpu.core_type = #tpu.core_type<tc>, window_params = [{transform_indices = @transform_0, window_bounds = array<i64: 2, 32>}, {transform_indices = @transform_1, window_bounds = array<i64: 2, 8, 32>}, {pipeline_mode = #tpu.pipeline_mode<synchronous>, transform_indices = @transform_2, window_bounds = array<i64: 2, 32>}, {transform_indices = @transform_3, window_bounds = array<i64: 1>}, {transform_indices = @transform_4, window_bounds = array<i64: 2, 32>}]} {
    %c0 = arith.constant 0 : index
    %c0_0 = arith.constant 0 : index
    %0 = vector.load %arg1[%c0, %c0_0] : memref<2x32xf32, #tpu.memory_space<vmem>>, vector<2x32xf32>
    %c0_1 = arith.constant 0 : index
    %c0_2 = arith.constant 0 : index
    %c0_3 = arith.constant 0 : index
    %1 = vector.load %arg2[%c0_1, %c0_2, %c0_3] : memref<2x8x32xf32, #tpu.memory_space<vmem>>, vector<2x8x32xf32>
    %c0_4 = arith.constant 0 : index
    %c0_5 = arith.constant 0 : index
    %2 = vector.load %arg3[%c0_4, %c0_5] : memref<2x32xf32, #tpu.memory_space<vmem>>, vector<2x32xf32>
    %3 = vector.extract_strided_slice %2 {offsets = [0, 0], sizes = [1, 32], strides = [1, 1]} : vector<2x32xf32> to vector<1x32xf32>
    %4 = vector.shape_cast %3 : vector<1x32xf32> to vector<32xf32>
    %5 = vector.extract_strided_slice %2 {offsets = [1, 0], sizes = [1, 32], strides = [1, 1]} : vector<2x32xf32> to vector<1x32xf32>
    %6 = vector.shape_cast %5 : vector<1x32xf32> to vector<32xf32>
    %c0_6 = arith.constant 0 : index
    %7 = memref.load %arg4[%c0_6] : memref<1xf32, #tpu.memory_space<smem>>
    %8 = vector.shape_cast %4 : vector<32xf32> to vector<1x32xf32>
    %9 = vector.broadcast %8 : vector<1x32xf32> to vector<2x32xf32>
    %10 = arith.mulf %0, %9 : vector<2x32xf32>
    %cst = arith.constant dense<0.000000e+00> : vector<2xf32>
    %11 = vector.multi_reduction <add>, %10, %cst [1] : vector<2x32xf32> to vector<2xf32>
    %12 = vector.shape_cast %11 : vector<2xf32> to vector<2x1xf32>
    %13 = vector.shape_cast %6 : vector<32xf32> to vector<1x1x32xf32>
    %14 = vector.broadcast %13 : vector<1x1x32xf32> to vector<2x8x32xf32>
    %15 = arith.mulf %1, %14 : vector<2x8x32xf32>
    %cst_7 = arith.constant dense<0.000000e+00> : vector<2x8xf32>
    %16 = vector.multi_reduction <add>, %15, %cst_7 [2] : vector<2x8x32xf32> to vector<2x8xf32>
    %17 = vector.broadcast %12 : vector<2x1xf32> to vector<2x8xf32>
    %18 = arith.addf %16, %17 : vector<2x8xf32>
    %19 = vector.broadcast %7 : f32 to vector<2x8xf32>
    %20 = arith.addf %18, %19 : vector<2x8xf32>
    %21 = math.tanh %20 : vector<2x8xf32>
    %cst_8 = arith.constant dense<0xFF800000> : vector<2xf32>
    %22 = vector.multi_reduction <maximumf>, %21, %cst_8 [1] : vector<2x8xf32> to vector<2xf32>
    %23 = vector.shape_cast %22 : vector<2xf32> to vector<2x1xf32>
    %24 = vector.broadcast %23 : vector<2x1xf32> to vector<2x8xf32>
    %25 = arith.subf %21, %24 : vector<2x8xf32>
    %26 = math.exp %25 : vector<2x8xf32>
    %cst_9 = arith.constant dense<0.000000e+00> : vector<2xf32>
    %27 = vector.multi_reduction <add>, %26, %cst_9 [1] : vector<2x8xf32> to vector<2xf32>
    %28 = vector.shape_cast %27 : vector<2xf32> to vector<2x1xf32>
    %29 = vector.broadcast %28 : vector<2x1xf32> to vector<2x8xf32>
    %30 = arith.divf %26, %29 : vector<2x8xf32>
    %31 = vector.shape_cast %30 : vector<2x8xf32> to vector<2x8x1xf32>
    %32 = vector.broadcast %31 : vector<2x8x1xf32> to vector<2x8x32xf32>
    %33 = arith.mulf %32, %1 : vector<2x8x32xf32>
    %cst_10 = arith.constant dense<0.000000e+00> : vector<2x32xf32>
    %34 = vector.multi_reduction <add>, %33, %cst_10 [1] : vector<2x8x32xf32> to vector<2x32xf32>
    %c0_11 = arith.constant 0 : index
    %c0_12 = arith.constant 0 : index
    %35 = vector.load %arg5[%c0_11, %c0_12] : memref<2x32xf32, #tpu.memory_space<vmem>>, vector<2x32xf32>
    tpu.vector_store %arg5[%c0_11, %c0_12], %34 {strides = array<i32>} : memref<2x32xf32, #tpu.memory_space<vmem>>, vector<2x32xf32>,
    return
  }
  func.func @transform_0(%arg0: i32) -> (i32, i32) {
    %c0_i32 = arith.constant 0 : i32
    %c0_i32_0 = arith.constant 0 : i32
    return %arg0, %c0_i32 : i32, i32
  }
  func.func @transform_1(%arg0: i32) -> (i32, i32, i32) {
    %c0_i32 = arith.constant 0 : i32
    %c0_i32_0 = arith.constant 0 : i32
    %c0_i32_1 = arith.constant 0 : i32
    return %arg0, %c0_i32, %c0_i32_0 : i32, i32, i32
  }
  func.func @transform_2(%arg0: i32) -> (i32, i32) {
    %c0_i32 = arith.constant 0 : i32
    %c0_i32_0 = arith.constant 0 : i32
    %c0_i32_1 = arith.constant 0 : i32
    return %c0_i32, %c0_i32_0 : i32, i32
  }
  func.func @transform_3(%arg0: i32) -> i32 {
    %c0_i32 = arith.constant 0 : i32
    %c0_i32_0 = arith.constant 0 : i32
    return %c0_i32 : i32
  }
  func.func @transform_4(%arg0: i32) -> (i32, i32) {
    %c0_i32 = arith.constant 0 : i32
    %c0_i32_0 = arith.constant 0 : i32
    return %arg0, %c0_i32 : i32, i32
  }
}

</mosaic_0001>

<bundles_post_ra>
// kernel: tpu_custom_call.1
= control target key start
LH: loop header
LB: loop body
LE: loop exit
PB: predicated region body
PF: predicated region fallthrough
CT: control target
= control target key end

     0   :  { %10 = vsyncpa [#allocation4], 0  ;;  %s363_s0 = inlined_call_operand.vmem [shape: f32[2,32], index: 0, kind: input, shape index: {}]   ;;  %s364_s1 = inlined_call_operand.hbm [shape: f32[2,8,32], index: 1, kind: input, shape index: {}]   ;;  %s365_s2 = inlined_call_operand.vmem [shape: f32[2,32], index: 2, kind: input, shape index: {}]   ;;  %s366_s3 = inlined_call_operand.<no memory space> [shape: f32[1], index: 3, kind: input, shape index: {}]   ;;  %s367_s4 = inlined_call_operand.hbm [shape: f32[2,32], index: 4, kind: output, shape index: {}]  }
   0x1   :  { %11 = vsyncpa [#allocation5], 0  ;;  %s269_s15 = smov [#allocation3]   ;;  %s221_s19 = scalar_lea.hbm %s364_s1, 256 }
   0x2   :  { %s19_s16 = sshll.u32 %s269_s15, 4  ;;  %p222_p0 = scmp.ne.s32.totalorder %s364_s1, %s221_s19  ;;  %s20_s16 = int_to_ptr.vmem [resolvable:$true] %s19_s16 }
   0x3   :  { %p225_p1 = scmp.lt.u32.totalorder %s221_s19, %s364_s1 }
   0x5   :  { %p227_p2 = pnand %p225_p1, %p222_p0 }
   0x7   :  { %230 = shalt.err (!%p227_p2)
}
   0x8   :  { %s231_s24 = scalar_lea.vmem %s20_s16, 256  ;;  %p236_p4 = scmp.lt.s32.totalorder %s20_s16, %s20_s16 }
   0x9   :  { %p232_p3 = scmp.ne.s32.totalorder %s20_s16, %s231_s24  ;;  %p237_p5 = scmp.lt.s32.totalorder %s231_s24, %s231_s24 }
   0xb   :  { %p238_p6 = por %p237_p5, %p236_p4 }
   0xd   :  { %p239_p7 = pnand %p238_p6, %p232_p3 }
   0xf   :  { %242 = shalt.err (!%p239_p7)
}
  0x10   :  { %s270_s25 = smov 128   ;;  %s271_s26 = smov 8  }
  0x11   :  { %25 = dma.hbm_to_vmem [thread:$0]  %s364_s1, 256, %s20_s16, [#allocation4], %s270_s25, %s270_s25, %s271_s26  }
  0x12   :  { %265 = dma.done.wait [#allocation4], 256  }
  0x13   :  { %266 = vsyncadd [#allocation4], 4294967040  ;;  %v38_v0 = vlaneseq  ;;  %v33_v4 = vld [vmem:[%s363_s0] sm:$0x3]  ;;  %v321_v6 = vld [vmem:[#allocation3 + $0x8] sm:$0xff]  ;;  %vm43_vm0 = vcmask 254976   ;;  %v73_v22 = vstv %s366_s3 }
  0x14   :  { %v36_v5 = vld [vmem:[%s365_s2] sm:$0x3]  ;;  %vm53_vm1 = vcmask 261120   ;;  %v272_v16 = vmov 0   ;;  %vm96_vm2 = vcmask 1041409   ;;  %vm99_vm3 = vcmask 58368  }
  0x15   :  { %v39_v1 = vshrl.u32 %v38_v0, 7  ;;  %v325_v9 = vld [vmem:[#allocation3] sm:$0xff]  ;;  %208 = vset.pattern.permute.xlu0 %v272_v16  ;;  %207 = vset.pattern.permute.xlu1 %v272_v16  ;;  %v87_v17 = vand.u32 127, %v38_v0  ;;  %s273_s2 = smov [#allocation6]  }
  0x16   :  { %s193_s3 = sshll.u32 %s273_s2, 4  ;;  %s194_s3 = int_to_ptr.vmem [resolvable:$true] %s193_s3 }
  0x17   :  { %v311_v2 = vsub.s32 0, %v39_v1  ;;  %v313_v3 = vsub.s32 1, %v39_v1  ;;  %v90_v18 = vsub.s32 %v87_v17, %v39_v1  ;;  %s243_s7 = scalar_lea.vmem %s194_s3, 32  ;;  %p248_p9 = scmp.lt.s32.totalorder %s194_s3, %s194_s3 }
  0x18   :  { %p244_p8 = scmp.ne.s32.totalorder %s194_s3, %s243_s7  ;;  %p249_p10 = scmp.lt.s32.totalorder %s243_s7, %s243_s7 }
  0x19   :  { %v41_v7 = vrot.slane %v36_v5, %v311_v2  ;;  %v50_v8 = vrot.slane %v36_v5, %v313_v3 }
  0x1a   :  { %p250_p11 = por %p249_p10, %p248_p9 }
  0x1b   :  { %v42_v10 = vmul.f32 %v41_v7, %v33_v4  ;;  %v52_v11 = vmul.f32 %v50_v8, %v321_v6  ;;  %v51_v12 = vmul.f32 %v50_v8, %v325_v9 }
  0x1c   :  { %p251_p12 = pnand %p250_p11, %p244_p8 }
  0x1d   :  { %v44_v13 = vsel %vm43_vm0, %v42_v10, 0.0  ;;  %v57_v14 = vsel %vm53_vm1, %v52_v11, 0.0  ;;  %v54_v15 = vsel %vm53_vm1, %v51_v12, 0.0 }
  0x1e   :  { %45 = vadd.xlane.f32.xlu0 %v44_v13  ;;  %58 = vadd.xlane.f32.xlu1 %v57_v14 }
  0x22   :  { %55 = vadd.xlane.f32.xlu0 %v54_v15 }
  0xab   :  { %v46_v19 = vpop.xlane.xlu0 %45  ;;  %v59_v20 = vpop.xlane.xlu1 %58 }
  0xac   :  { %v68_v21 = vrot.slane %v46_v19, %v313_v3  ;;  %v64_v23 = vrot.slane %v46_v19, %v311_v2 }
  0xae   :  { %v72_v24 = vadd.f32 %v68_v21, %v59_v20 }
  0xaf   :  { %v56_v25 = vpop.xlane.xlu0 %55 }
  0xb0   :  { %v75_v26 = vadd.f32 %v73_v22, %v72_v24  ;;  %v71_v27 = vadd.f32 %v64_v23, %v56_v25 }
  0xb2   :  { %209 = vtanh.f32 %v75_v26  ;;  %v74_v28 = vadd.f32 %v73_v22, %v71_v27 }
  0xb4   :  { %211 = vtanh.f32 %v74_v28 }
  0xbc   :  { %v210_v29 = vpop.eup %209 }
  0xbd   :  { %84 = vperm.xlu0 %208, %v210_v29  }
  0xbe   :  { %v212_v30 = vpop.eup %211 }
  0xbf   :  { %81 = vperm.xlu1 %207, %v212_v30  }
 0x13c   :  { %v85_v31 = vpop.permute.xlu0 %84 }
 0x13d   :  { %v95_v33 = vrot.slane %v85_v31, %v90_v18 }
 0x13e   :  { %v82_v32 = vpop.permute.xlu1 %81 }
 0x13f   :  { %v91_v34 = vrot.slane %v82_v32, %v90_v18 }
 0x141   :  { %v97_v35 = vsel %vm96_vm2, %v95_v33, %v91_v34 }
 0x142   :  { %v100_v36 = vsel %vm99_vm3, %v97_v35, -inf }
 0x143   :  { %101 = vmax.xlane.f32.xlu1 %v100_v36 }
 0x1d0   :  { %v102_v37 = vpop.xlane.xlu1 %101 }
 0x1d1   :  { %v107_v38 = vrot.slane %v102_v37, %v311_v2  ;;  %v111_v39 = vrot.slane %v102_v37, %v313_v3 }
 0x1d3   :  { %v114_v40 = vsub.f32 %v212_v30, %v107_v38  ;;  %v115_v41 = vsub.f32 %v210_v29, %v111_v39 }
 0x1d5   :  { %v116_v42 = vmul.f32 1.442695, %v114_v40  ;;  %v118_v43 = vmul.f32 1.442695, %v115_v41 }
 0x1d7   :  { %213 = vpow2.f32 %v116_v42 }
 0x1d8   :  { %215 = vpow2.f32 %v118_v43 }
 0x1e1   :  { %v214_v44 = vpop.eup %213 }
 0x1e2   :  { %123 = vperm.xlu0 %208, %v214_v44   ;;  %v216_v45 = vpop.eup %215 }
 0x1e6   :  { %126 = vperm.xlu0 %208, %v216_v45  }
 0x261   :  { %v124_v46 = vpop.permute.xlu0 %123 }
 0x262   :  { %v131_v48 = vrot.slane %v124_v46, %v90_v18 }
 0x265   :  { %v127_v47 = vpop.permute.xlu0 %126 }
 0x266   :  { %v135_v49 = vrot.slane %v127_v47, %v90_v18 }
 0x268   :  { %v136_v50 = vsel %vm96_vm2, %v135_v49, %v131_v48 }
 0x269   :  { %v138_v51 = vsel %vm99_vm3, %v136_v50, 0.0 }
 0x26a   :  { %139 = vadd.xlane.f32.xlu1 %v138_v51 }
 0x2f7   :  { %v140_v52 = vpop.xlane.xlu1 %139 }
 0x2f8   :  { %v145_v53 = vrot.slane %v140_v52, %v311_v2  ;;  %v149_v54 = vrot.slane %v140_v52, %v313_v3 }
 0x2fa   :  { %217 = vrcp.f32 %v145_v53 }
 0x2fb   :  { %219 = vrcp.f32 %v149_v54 }
 0x304   :  { %v218_v55 = vpop.eup %217 }
 0x305   :  { %v220_v56 = vpop.eup %219  ;;  %v153_v57 = vmul.f32 %v218_v55, %v214_v44 }
 0x306   :  { %v155_v58 = vmul.f32 %v220_v56, %v216_v45 }
 0x307   :  { %158 = vperm.xlu0 %208, %v153_v57  }
 0x308   :  { %163 = vperm.xlu1 %207, %v155_v58  }
 0x386   :  { %v159_v59 = vpop.permute.xlu0 %158 }
 0x387   :  { %v164_v60 = vpop.permute.xlu1 %163  ;;  %v166_v61 = vmul.f32 %v159_v59, %v325_v9 }
 0x388   :  { %v167_v62 = vmul.f32 %v164_v60, %v321_v6 }
 0x389   :  { %v168_v63 = vsel %vm53_vm1, %v166_v61, 0.0 }
 0x38a   :  { %v175_v0 = vsel %vm53_vm1, %v167_v62, 0.0  ;;  %v169_v1 = vrot.slane %v168_v63, 4 }
 0x38b   :  { %v176_v2 = vrot.slane %v175_v0, 4 }
 0x38c   :  { %v170_v3 = vadd.f32 %v169_v1, %v168_v63 }
 0x38d   :  { %v177_v4 = vadd.f32 %v176_v2, %v175_v0 }
 0x38e   :  { %v171_v5 = vrot.slane %v170_v3, 2 }
 0x38f   :  { %v178_v7 = vrot.slane %v177_v4, 2 }
 0x390   :  { %v172_v8 = vadd.f32 %v171_v5, %v170_v3 }
 0x391   :  { %v179_v10 = vadd.f32 %v178_v7, %v177_v4 }
 0x392   :  { %v173_v11 = vrot.slane %v172_v8, 1 }
 0x393   :  { %v180_v12 = vrot.slane %v179_v10, 1 }
 0x394   :  { %v174_v13 = vadd.f32 %v173_v11, %v172_v8 }
 0x395   :  { %v181_v9 = vadd.f32 %v180_v12, %v179_v10 }
 0x397   :  { %v184_v6 = vsel %vm96_vm2, %v181_v9, %v174_v13 }
 0x398   :  { %186 = vst.msk [vmem:[#allocation6] sm:$0x3] %vm43_vm0, %v184_v6 }
 0x399   :  { %254 = shalt.err (!%p251_p12)
}
 0x39a   :  { %s255_s10 = scalar_lea.hbm %s367_s4, 32 }
 0x39b   :  { %p256_p13 = scmp.ne.s32.totalorder %s367_s4, %s255_s10  ;;  %p259_p0 = scmp.lt.u32.totalorder %s255_s10, %s367_s4 }
 0x39d   :  { %p261_p1 = pnand %p259_p0, %p256_p13 }
 0x39f   :  { %264 = shalt.err (!%p261_p1)
}
 0x3a0   :  { %196 = dma.vmem_to_hbm [thread:$0]  %s194_s3, 32, %s367_s4, [#allocation5]  }
 0x3a1   :  { %267 = dma.done.wait [#allocation5], 32  }
 0x3a2   :  { %268 = vsyncadd [#allocation5], 4294967264 }
 0x3a3   :  { %200 = vsyncpa [#allocation4], 1 }
 0x3a4   :  { %201 = vsyncpa [#allocation5], 1 }

</bundles_post_ra>
